<compile_context>
chip_gen: v7x
topology: tpu7x:2x2x1
jax: 0.10.0
libtpu: 0.0.40
codegen_flags: <defaults>
</compile_context>

<pallas_src>
import functools

import jax
import jax.numpy as jnp
from jax.experimental import pallas as pl
from jax.experimental.pallas import tpu as pltpu

GAMMA_NEG = 4      # module default (integer -> pow becomes repeated multiply)
GAMMA_POS = 1      # module default
CLIP = 0.05
EPS = 1e-8


def _round_up(n, m):
    return ((n + m - 1) // m) * m


def _cdiv(a, b):
    return -(-a // b)


def _sublane_granule(dtype):
    """Min sublane multiple for a block of this dtype (packed dtypes pack sublanes)."""
    size = jnp.dtype(dtype).itemsize
    if size >= 4:
        return 8
    if size == 2:
        return 16
    return 32


def _asl_kernel(x_ref, y_ref, out_ref, *, valid_b, valid_c):
    """One (tb, tc) tile: weighted ASL loss folded into a resident (1, 8, 128) partial."""
    i = pl.program_id(0)   # batch block (parallel)
    j = pl.program_id(1)   # class block (reduction axis, last in grid, arbitrary)

    @pl.when(j == 0)
    def _():
        out_ref[...] = jnp.zeros_like(out_ref)

    x = x_ref[...].astype(jnp.float32)
    y = y_ref[...].astype(jnp.float32)
    tb, tc = x.shape

    # sigmoid via a single EUP tanh: sigmoid(x) = 0.5*tanh(0.5*x) + 0.5
    xs_pos = 0.5 * jnp.tanh(0.5 * x) + 0.5
    xs_neg = jnp.minimum((1.0 - xs_pos) + CLIP, 1.0)   # probability shift + clamp(max=1)

    is_pos = y > 0.5
    # For hard 0/1 labels, y*log(xs_pos)+(1-y)*log(xs_neg) == log of the selected prob.
    pt = jnp.where(is_pos, xs_pos, xs_neg)
    loss = jnp.log(jnp.maximum(pt, EPS))

    # Asymmetric focusing weight: (1-pt)^gamma with gamma in {GAMMA_POS=1, GAMMA_NEG=4}.
    # Integer gammas + hard labels -> exact select between b and b^4 (pure VPU, no EUP).
    b = 1.0 - pt
    b2 = b * b
    loss = loss * jnp.where(is_pos, b, b2 * b2)

    # Ragged-edge masking (only emitted when the static shape requires it). Out-of-bounds
    # parts of a partial tile hold unspecified data; zero their contribution here instead
    # of paying a full HBM pad/copy in the wrapper.
    mask = None
    if valid_b % tb != 0:
        row = jax.lax.broadcasted_iota(jnp.int32, (tb, tc), 0) + i * tb
        mask = row < valid_b
    if valid_c % tc != 0:
        col = jax.lax.broadcasted_iota(jnp.int32, (tb, tc), 1) + j * tc
        cmask = col < valid_c
        mask = cmask if mask is None else (mask & cmask)
    if mask is not None:
        loss = jnp.where(mask, loss, 0.0)

    # Fold the (tb, tc) tile onto one (8, 128) vreg using only tile-aligned static slices
    # and elementwise adds (pure VPU). The single cross-lane/sublane reduction happens in
    # the wrapper over the tiny (nb, 8, 128) partials array.
    p = loss[:, 0:128]
    for l in range(1, tc // 128):
        p = p + loss[:, l * 128:(l + 1) * 128]
    q = p[0:8, :]
    for s in range(1, tb // 8):
        q = q + p[s * 8:(s + 1) * 8, :]
    out_ref[...] += q[None]


@functools.partial(jax.jit, static_argnames=("tile_b", "tile_c"))
def asymmetric_loss(x, y, *, tile_b=256, tile_c=2048):
    """x: [B, C] logits, y: [B, C] 0/1 multi-label targets. Returns scalar f32 loss.

    Inputs may be bf16 (logits) / int8 (targets) to cut HBM traffic; compute is f32.
    Cast at the producer -- the kernel casts in-VMEM, no extra HBM pass is added here.
    """
    B, C = x.shape
    assert y.shape == (B, C), (x.shape, y.shape)

    # Sublane granule depends on the narrowest streamed dtype (f32:8, bf16:16, int8:32).
    g = max(_sublane_granule(x.dtype), _sublane_granule(y.dtype))

    tb = min(_round_up(tile_b, g), _round_up(B, g))
    tc = min(_round_up(tile_c, 128), _round_up(C, 128))

    nb = _cdiv(B, tb)
    # v7x megacore: the batch axis is the "parallel" one; make sure it has >= 2 blocks
    # whenever the batch is large enough to split, so both TensorCores get work.
    if nb == 1 and B >= 2 * g:
        tb = _round_up(_cdiv(B, 2), g)
        nb = _cdiv(B, tb)
    # TODO(synk): for tiny batches (B < 2*g) on v7x, split the class axis into a
    # (parallel, arbitrary) pair of grid axes so both TensorCores still engage.
    nc = _cdiv(C, tc)

    kernel = functools.partial(_asl_kernel, valid_b=B, valid_c=C)

    in_bytes = x.size * x.dtype.itemsize + y.size * y.dtype.itemsize
    cost = pl.CostEstimate(
        flops=16 * B * C,
        transcendentals=2 * B * C,          # tanh + log per element
        bytes_accessed=in_bytes + nb * 8 * 128 * 4,
    )

    partials = pl.pallas_call(
        kernel,
        out_shape=jax.ShapeDtypeStruct((nb, 8, 128), jnp.float32),
        grid_spec=pltpu.PrefetchScalarGridSpec(
            num_scalar_prefetch=0,
            grid=(nb, nc),
            in_specs=[
                pl.BlockSpec((tb, tc), lambda i, j: (i, j)),
                pl.BlockSpec((tb, tc), lambda i, j: (i, j)),
            ],
            out_specs=pl.BlockSpec((1, 8, 128), lambda i, j: (i, 0, 0)),
        ),
        compiler_params=pltpu.CompilerParams(
            # batch-block axis: independent per-block outputs -> megacore-shardable;
            # class axis: resident-accumulator reduction, must stay sequential.
            dimension_semantics=("parallel", "arbitrary"),
            # Explicit 32 MiB: raises v5e's 16 MiB default, matches v6e/v7x scoped default.
            vmem_limit_bytes=32 * 1024 * 1024,
        ),
        cost_estimate=cost,
    )(x, y)

    return -jnp.sum(partials)


def _asymmetric_loss_ref(x, y):
    """Pure-JAX reference: direct transcription of the PyTorch module (f32)."""
    x = x.astype(jnp.float32)
    y = y.astype(jnp.float32)
    xs = jax.nn.sigmoid(x)
    xs_pos = xs
    xs_neg = jnp.minimum(1.0 - xs + CLIP, 1.0)
    los_pos = y * jnp.log(jnp.maximum(xs_pos, EPS))
    los_neg = (1.0 - y) * jnp.log(jnp.maximum(xs_neg, EPS))
    loss = los_pos + los_neg
    pt = xs_pos * y + xs_neg * (1.0 - y)
    gamma = GAMMA_POS * y + GAMMA_NEG * (1.0 - y)
    loss = loss * jnp.power(1.0 - pt, gamma)
    return -jnp.sum(loss)


if __name__ == "__main__":
    key = jax.random.PRNGKey(0)
    kx, ky = jax.random.split(key)

    # 1) Small aligned multi-label problem: 8 samples, 256 classes (f32).
    B, C = 8, 256
    x = jax.random.normal(kx, (B, C), dtype=jnp.float32) * 2.0
    y = (jax.random.uniform(ky, (B, C)) < 0.3).astype(jnp.float32)
    loss = asymmetric_loss(x, y)
    jax.block_until_ready(loss)
    ref = _asymmetric_loss_ref(x, y)
    assert jnp.allclose(loss, ref, rtol=1e-4, atol=1e-3), (loss, ref)

    # 2) Ragged shapes exercising the in-kernel masking path (no wrapper padding).
    B2, C2 = 6, 200
    x2 = jax.random.normal(kx, (B2, C2), dtype=jnp.float32) * 2.0
    y2 = (jax.random.uniform(ky, (B2, C2)) < 0.3).astype(jnp.float32)
    loss2 = asymmetric_loss(x2, y2)
    jax.block_until_ready(loss2)
    ref2 = _asymmetric_loss_ref(x2, y2)
    assert jnp.allclose(loss2, ref2, rtol=1e-4, atol=1e-3), (loss2, ref2)

    # 3) Low-precision streaming path: bf16 logits + int8 hard targets.
    B3, C3 = 16, 384
    x3 = (jax.random.normal(kx, (B3, C3), dtype=jnp.float32) * 2.0).astype(jnp.bfloat16)
    y3 = (jax.random.uniform(ky, (B3, C3)) < 0.3).astype(jnp.int8)
    loss3 = asymmetric_loss(x3, y3)
    jax.block_until_ready(loss3)
    ref3 = _asymmetric_loss_ref(x3, y3)
    assert jnp.allclose(loss3, ref3, rtol=1e-4, atol=1e-3), (loss3, ref3)

    print("KERNEL_OK")
</pallas_src>

<mosaic_0001>
module attributes {stable_mosaic.version = 11 : i64} {
  func.func @_asl_kernel(%arg0: i32, %arg1: i32, %arg2: memref<8x256xf32, #tpu.memory_space<vmem>>, %arg3: memref<8x256xf32, #tpu.memory_space<vmem>>, %arg4: memref<1x8x128xf32, #tpu.memory_space<vmem>>) attributes {dimension_semantics = [#tpu.dimension_semantics<parallel>, #tpu.dimension_semantics<arbitrary>], iteration_bounds = array<i64: 1, 1>, scalar_prefetch = 0 : i64, scratch_operands = 0 : i64, tpu.core_type = #tpu.core_type<tc>, window_params = [{transform_indices = @transform_0, window_bounds = array<i64: 8, 256>}, {transform_indices = @transform_1, window_bounds = array<i64: 8, 256>}, {transform_indices = @transform_2, window_bounds = array<i64: 1, 8, 128>}]} {
    %c0_i32 = arith.constant 0 : i32
    %0 = arith.cmpi eq, %arg1, %c0_i32 : i32
    %1 = arith.extui %0 : i1 to i32
    %c0_i32_0 = arith.constant 0 : i32
    %2 = arith.cmpi ne, %1, %c0_i32_0 : i32
    scf.if %2 {
      %cst_18 = arith.constant 0.000000e+00 : f32
      %37 = vector.broadcast %cst_18 : f32 to vector<1x8x128xf32>
      %c0_19 = arith.constant 0 : index
      %c0_20 = arith.constant 0 : index
      %c0_21 = arith.constant 0 : index
      %38 = vector.load %arg4[%c0_19, %c0_20, %c0_21] : memref<1x8x128xf32, #tpu.memory_space<vmem>>, vector<1x8x128xf32>
      tpu.vector_store %arg4[%c0_19, %c0_20, %c0_21], %37 {strides = array<i32>} : memref<1x8x128xf32, #tpu.memory_space<vmem>>, vector<1x8x128xf32>,
    } else {
    }
    %c0 = arith.constant 0 : index
    %c0_1 = arith.constant 0 : index
    %3 = vector.load %arg2[%c0, %c0_1] : memref<8x256xf32, #tpu.memory_space<vmem>>, vector<8x256xf32>
    %c0_2 = arith.constant 0 : index
    %c0_3 = arith.constant 0 : index
    %4 = vector.load %arg3[%c0_2, %c0_3] : memref<8x256xf32, #tpu.memory_space<vmem>>, vector<8x256xf32>
    %cst = arith.constant 5.000000e-01 : f32
    %5 = vector.broadcast %cst : f32 to vector<8x256xf32>
    %6 = arith.mulf %5, %3 : vector<8x256xf32>
    %7 = math.tanh %6 : vector<8x256xf32>
    %cst_4 = arith.constant 5.000000e-01 : f32
    %8 = vector.broadcast %cst_4 : f32 to vector<8x256xf32>
    %9 = arith.mulf %8, %7 : vector<8x256xf32>
    %cst_5 = arith.constant 5.000000e-01 : f32
    %10 = vector.broadcast %cst_5 : f32 to vector<8x256xf32>
    %11 = arith.addf %9, %10 : vector<8x256xf32>
    %cst_6 = arith.constant 1.000000e+00 : f32
    %12 = vector.broadcast %cst_6 : f32 to vector<8x256xf32>
    %13 = arith.subf %12, %11 : vector<8x256xf32>
    %cst_7 = arith.constant 5.000000e-02 : f32
    %14 = vector.broadcast %cst_7 : f32 to vector<8x256xf32>
    %15 = arith.addf %13, %14 : vector<8x256xf32>
    %cst_8 = arith.constant 1.000000e+00 : f32
    %16 = vector.broadcast %cst_8 : f32 to vector<8x256xf32>
    %17 = arith.minimumf %15, %16 : vector<8x256xf32>
    %cst_9 = arith.constant 5.000000e-01 : f32
    %18 = vector.broadcast %cst_9 : f32 to vector<8x256xf32>
    %19 = arith.cmpf ogt, %4, %18 : vector<8x256xf32>
    %20 = arith.select %19, %11, %17 : vector<8x256xi1>, vector<8x256xf32>
    %cst_10 = arith.constant 9.99999993E-9 : f32
    %21 = vector.broadcast %cst_10 : f32 to vector<8x256xf32>
    %22 = arith.maximumf %20, %21 : vector<8x256xf32>
    %23 = math.log %22 : vector<8x256xf32>
    %cst_11 = arith.constant 1.000000e+00 : f32
    %24 = vector.broadcast %cst_11 : f32 to vector<8x256xf32>
    %25 = arith.subf %24, %20 : vector<8x256xf32>
    %26 = arith.mulf %25, %25 : vector<8x256xf32>
    %27 = arith.mulf %26, %26 : vector<8x256xf32>
    %28 = arith.select %19, %25, %27 : vector<8x256xi1>, vector<8x256xf32>
    %29 = arith.mulf %23, %28 : vector<8x256xf32>
    %30 = vector.extract_strided_slice %29 {offsets = [0, 0], sizes = [8, 128], strides = [1, 1]} : vector<8x256xf32> to vector<8x128xf32>
    %31 = vector.extract_strided_slice %29 {offsets = [0, 128], sizes = [8, 128], strides = [1, 1]} : vector<8x256xf32> to vector<8x128xf32>
    %32 = arith.addf %30, %31 : vector<8x128xf32>
    %c0_12 = arith.constant 0 : index
    %c0_13 = arith.constant 0 : index
    %c0_14 = arith.constant 0 : index
    %33 = vector.load %arg4[%c0_12, %c0_13, %c0_14] : memref<1x8x128xf32, #tpu.memory_space<vmem>>, vector<1x8x128xf32>
    %34 = vector.shape_cast %32 : vector<8x128xf32> to vector<1x8x128xf32>
    %35 = arith.addf %33, %34 : vector<1x8x128xf32>
    %c0_15 = arith.constant 0 : index
    %c0_16 = arith.constant 0 : index
    %c0_17 = arith.constant 0 : index
    %36 = vector.load %arg4[%c0_15, %c0_16, %c0_17] : memref<1x8x128xf32, #tpu.memory_space<vmem>>, vector<1x8x128xf32>
    tpu.vector_store %arg4[%c0_15, %c0_16, %c0_17], %35 {strides = array<i32>} : memref<1x8x128xf32, #tpu.memory_space<vmem>>, vector<1x8x128xf32>,
    return
  }
  func.func @transform_0(%arg0: i32, %arg1: i32) -> (i32, i32) {
    %c0_i32 = arith.constant 0 : i32
    return %arg0, %arg1 : i32, i32
  }
  func.func @transform_1(%arg0: i32, %arg1: i32) -> (i32, i32) {
    %c0_i32 = arith.constant 0 : i32
    return %arg0, %arg1 : i32, i32
  }
  func.func @transform_2(%arg0: i32, %arg1: i32) -> (i32, i32, i32) {
    %c0_i32 = arith.constant 0 : i32
    %c0_i32_0 = arith.constant 0 : i32
    %c0_i32_1 = arith.constant 0 : i32
    return %arg0, %c0_i32, %c0_i32_0 : i32, i32, i32
  }
}

</mosaic_0001>

<bundles_post_ra>
// kernel: asymmetric_loss.1
= control target key start
LH: loop header
LB: loop body
LE: loop exit
PB: predicated region body
PF: predicated region fallthrough
CT: control target
= control target key end

     0   :  { %7 = vsyncpa [#allocation3], 0  ;;  %s195_s0 = inlined_call_operand.hbm [shape: f32[8,256], index: 0, kind: input, shape index: {}]   ;;  %s196_s1 = inlined_call_operand.hbm [shape: f32[8,256], index: 1, kind: input, shape index: {}]   ;;  %s197_s2 = inlined_call_operand.vmem [shape: f32[1,8,128], index: 2, kind: output, shape index: {}]  }
   0x1   :  { %8 = vsyncpa [#allocation5], 0  ;;  %s147_s9 = smov [#allocation2]   ;;  %s148_s11 = smov [#allocation4]  }
   0x2   :  { %s15_s10 = sshll.u32 %s147_s9, 4  ;;  %s25_s12 = sshll.u32 %s148_s11, 4  ;;  %s16_s10 = int_to_ptr.vmem [resolvable:$true] %s15_s10  ;;  %s26_s12 = int_to_ptr.vmem [resolvable:$true] %s25_s12 }
   0x3   :  { %s99_s15 = scalar_lea.hbm %s195_s0, 256 }
   0x4   :  { %p100_p0 = scmp.ne.s32.totalorder %s195_s0, %s99_s15  ;;  %p103_p1 = scmp.lt.u32.totalorder %s99_s15, %s195_s0 }
   0x6   :  { %p105_p2 = pnand %p103_p1, %p100_p0 }
   0x8   :  { %108 = shalt.err (!%p105_p2)
}
   0x9   :  { %s109_s20 = scalar_lea.vmem %s16_s10, 256  ;;  %p114_p4 = scmp.lt.s32.totalorder %s16_s10, %s16_s10 }
   0xa   :  { %p110_p3 = scmp.ne.s32.totalorder %s16_s10, %s109_s20  ;;  %p115_p5 = scmp.lt.s32.totalorder %s109_s20, %s109_s20 }
   0xc   :  { %p116_p6 = por %p115_p5, %p114_p4 }
   0xe   :  { %p117_p7 = pnand %p116_p6, %p110_p3 }
  0x10   :  { %120 = shalt.err (!%p117_p7)
}
  0x11   :  { %18 = dma.hbm_to_vmem [thread:$0]  %s195_s0, 256, %s16_s10, [#allocation3]  }
  0x12   :  { %s121_s25 = scalar_lea.hbm %s196_s1, 256 }
  0x13   :  { %p122_p8 = scmp.ne.s32.totalorder %s196_s1, %s121_s25  ;;  %p125_p9 = scmp.lt.u32.totalorder %s121_s25, %s196_s1 }
  0x15   :  { %p127_p10 = pnand %p125_p9, %p122_p8 }
  0x17   :  { %130 = shalt.err (!%p127_p10)
}
  0x18   :  { %s131_s30 = scalar_lea.vmem %s26_s12, 256  ;;  %p136_p12 = scmp.lt.s32.totalorder %s26_s12, %s26_s12 }
  0x19   :  { %p132_p11 = scmp.ne.s32.totalorder %s26_s12, %s131_s30  ;;  %p137_p13 = scmp.lt.s32.totalorder %s131_s30, %s131_s30 }
  0x1b   :  { %p138_p0 = por %p137_p13, %p136_p12 }
  0x1d   :  { %p139_p1 = pnand %p138_p0, %p132_p11 }
  0x1f   :  { %142 = shalt.err (!%p139_p1)
}
  0x20   :  { %28 = dma.hbm_to_vmem [thread:$0]  %s196_s1, 256, %s26_s12, [#allocation5]  }
  0x21   :  { %143 = dma.done.wait [#allocation3], 256  }
  0x22   :  { %144 = vsyncadd [#allocation3], 4294967040 }
  0x23   :  { %145 = dma.done.wait [#allocation5], 256  }
  0x24   :  { %146 = vsyncadd [#allocation5], 4294967040  ;;  %v40_v0 = vld [vmem:[#allocation2] sm:$0xff]  ;;  %v41_v1 = vld [vmem:[#allocation2 + $0x8] sm:$0xff] }
  0x25   :  { %v44_v2 = vmul.f32 0.5, %v40_v0  ;;  %v45_v3 = vmul.f32 0.5, %v41_v1  ;;  %v42_v10 = vld [vmem:[#allocation4] sm:$0xff]  ;;  %v43_v12 = vld [vmem:[#allocation4 + $0x8] sm:$0xff] }
  0x26   :  { %vm58_vm0 = vcmp.gt.f32.partialorder %v42_v10, 0.5  ;;  %vm59_vm1 = vcmp.gt.f32.partialorder %v43_v12, 0.5 }
  0x27   :  { %91 = vtanh.f32 %v44_v2 }
  0x28   :  { %93 = vtanh.f32 %v45_v3 }
  0x31   :  { %v92_v4 = vpop.eup %91 }
  0x32   :  { %v94_v5 = vpop.eup %93  ;;  %v48_v6 = vmul.f32 0.5, %v92_v4 }
  0x33   :  { %v49_v7 = vmul.f32 0.5, %v94_v5 }
  0x34   :  { %v50_v8 = vadd.f32 0.5, %v48_v6 }
  0x35   :  { %v51_v9 = vadd.f32 0.5, %v49_v7 }
  0x36   :  { %v52_v11 = vsub.f32 1.0, %v50_v8 }
  0x37   :  { %v53_v13 = vsub.f32 1.0, %v51_v9 }
  0x38   :  { %v54_v14 = vadd.f32 0.05, %v52_v11 }
  0x39   :  { %v55_v15 = vadd.f32 0.05, %v53_v13 }
  0x3a   :  { %v56_v16 = vmin.f32 %v54_v14, 1.0 }
  0x3b   :  { %v57_v17 = vmin.f32 %v55_v15, 1.0 }
  0x3c   :  { %v60_v18 = vsel %vm58_vm0, %v50_v8, %v56_v16 }
  0x3d   :  { %v61_v19 = vsel %vm59_vm1, %v51_v9, %v57_v17  ;;  %v62_v20 = vmax.f32 %v60_v18, 1e-08  ;;  %v68_v21 = vsub.f32 1.0, %v60_v18 }
  0x3e   :  { %v63_v22 = vmax.f32 %v61_v19, 1e-08  ;;  %v69_v23 = vsub.f32 1.0, %v61_v19 }
  0x3f   :  { %95 = vlog2.f32 %v62_v20  ;;  %v70_v24 = vmul.f32 %v68_v21, %v68_v21 }
  0x40   :  { %97 = vlog2.f32 %v63_v22  ;;  %v71_v25 = vmul.f32 %v69_v23, %v69_v23 }
  0x41   :  { %v72_v26 = vmul.f32 %v70_v24, %v70_v24 }
  0x42   :  { %v73_v27 = vmul.f32 %v71_v25, %v71_v25 }
  0x43   :  { %v74_v29 = vsel %vm58_vm0, %v68_v21, %v72_v26 }
  0x44   :  { %v75_v32 = vsel %vm59_vm1, %v69_v23, %v73_v27 }
  0x49   :  { %v96_v28 = vpop.eup %95 }
  0x4a   :  { %v98_v30 = vpop.eup %97  ;;  %v65_v31 = vmul.f32 0.6931472, %v96_v28 }
  0x4b   :  { %v67_v33 = vmul.f32 0.6931472, %v98_v30 }
  0x4c   :  { %v76_v34 = vmul.f32 %v74_v29, %v65_v31 }
  0x4d   :  { %v77_v35 = vmul.f32 %v75_v32, %v67_v33 }
  0x4f   :  { %v78_v36 = vadd.f32 %v77_v35, %v76_v34 }
  0x51   :  { %81 = vst [vmem:[%s197_s2] sm:$0xff] %v78_v36 }
  0x52   :  { %86 = vsyncpa [#allocation3], 1 }
  0x53   :  { %87 = vsyncpa [#allocation5], 1 }

</bundles_post_ra>
